<compile_context>
chip_gen: v5e
topology: v5e:2x2
jax: 0.10.0
libtpu: 0.0.40
codegen_flags: <defaults>
</compile_context>

<pallas_src>
import functools

import jax
import jax.numpy as jnp
from jax.experimental import pallas as pl
from jax.experimental.pallas import tpu as pltpu


def _channel_attention_kernel(x_ref, w1_ref, w2t_ref, o_ref,
                              sum_acc, max_acc, *, hw_true, tile_hw):
    """Grid = (B, HW_tiles); one (C, tile_hw) slab of x per step.

    x_ref  : (C, tile_hw)   input tile (channels on sublanes, spatial on lanes)
    w1_ref : (Ch, C)        first 1x1-conv weight (no bias)
    w2t_ref: (Ch, C)        second 1x1-conv weight, pre-transposed
    o_ref  : (1, C)         per-batch attention weights (lane-dense)
    sum_acc, max_acc : (C, 1) f32 running reductions (persist across HW tiles)
    """
    t = pl.program_id(1)
    num_t = pl.num_programs(1)

    # ---- init accumulators at the first spatial tile ----
    @pl.when(t == 0)
    def _init():
        sum_acc[...] = jnp.zeros(sum_acc.shape, jnp.float32)
        max_acc[...] = jnp.full(max_acc.shape, -jnp.inf, jnp.float32)

    # ---- per-tile reduction (the HBM-bound part) ----
    x = x_ref[...]
    if x.dtype != jnp.float32:           # accumulate in f32 even for bf16 input
        x = x.astype(jnp.float32)

    if hw_true % tile_hw != 0:
        # The tail tile holds zero padding: zeros are neutral for the sum, but
        # the max must see -inf in the padded columns.
        col = jax.lax.broadcasted_iota(jnp.int32, x.shape, 1) + t * tile_hw
        x_for_max = jnp.where(col < hw_true, x, -jnp.inf)
    else:
        x_for_max = x

    sum_acc[...] = sum_acc[...] + jnp.sum(x, axis=-1, keepdims=True)
    max_acc[...] = jnp.maximum(max_acc[...],
                               jnp.max(x_for_max, axis=-1, keepdims=True))

    # ---- finalize: tiny shared MLP + sigmoid, once per batch element ----
    @pl.when(t == num_t - 1)
    def _finalize():
        avg = sum_acc[...] * (1.0 / float(hw_true))           # (C, 1)
        mx = max_acc[...]                                      # (C, 1)
        c = avg.shape[0]
        # stats = [avg | max] as a (C, 2) matrix (single MLP pass) built with a
        # lane-index select instead of a minor-dim concat.
        lane = jax.lax.broadcasted_iota(jnp.int32, (c, 2), 1)
        stats = jnp.where(lane == 0, avg, mx)                  # (C, 2)
        h = jnp.dot(w1_ref[...], stats,
                    preferred_element_type=jnp.float32)        # (Ch, 2)
        h = jnp.maximum(h, 0.0)                                # ReLU
        h_sum = jnp.sum(h, axis=-1, keepdims=True)             # (Ch, 1): avg+max branch
        # logits = (w2 @ h_sum)^T computed lane-dense as broadcast-mul + sublane reduce
        logits = jnp.sum(w2t_ref[...] * h_sum, axis=0, keepdims=True)   # (1, C)
        o_ref[...] = jax.nn.sigmoid(logits).astype(o_ref.dtype)


def channel_attention(x_nchw, w1, w2, *, tile_hw=None,
                      target_tile_bytes=4 * 1024 * 1024):
    """ChannelAttention forward. x_nchw: (B,C,H,W); w1: (C//16, C); w2: (C, C//16)."""
    B, C, H, W = x_nchw.shape
    Ch = w1.shape[0]
    assert w1.shape == (Ch, C) and w2.shape == (C, Ch)
    HW = H * W
    itemsize = jnp.dtype(x_nchw.dtype).itemsize

    # Spatial tile: multiple of 128 lanes, sized so one input buffer is
    # ~<= 4 MiB (double-buffered total stays inside the default scoped VMEM
    # on v5e/v6e/v7x; ~85% of HBM roofline already at this size).
    if tile_hw is None:
        cap = max(128, (target_tile_bytes // max(1, C * itemsize)) // 128 * 128)
        tile_hw = int(min(cap, pl.cdiv(HW, 128) * 128))
    assert tile_hw % 128 == 0, "tile_hw must be a multiple of 128 lanes"

    hw_pad = pl.cdiv(HW, tile_hw) * tile_hw
    n_tiles = hw_pad // tile_hw

    x_flat = x_nchw.reshape(B, C, HW)
    if hw_pad != HW:
        x_flat = jnp.pad(x_flat, ((0, 0), (0, 0), (0, hw_pad - HW)))
    w2t = jnp.transpose(w2)              # (Ch, C), lane-dense for the epilogue

    kernel = functools.partial(_channel_attention_kernel,
                               hw_true=HW, tile_hw=tile_hw)

    out = pl.pallas_call(
        kernel,
        out_shape=jax.ShapeDtypeStruct((B, 1, C), x_nchw.dtype),
        grid_spec=pltpu.PrefetchScalarGridSpec(
            num_scalar_prefetch=0,
            grid=(B, n_tiles),                      # reduction (HW) axis last
            in_specs=[
                pl.BlockSpec((pl.Squeezed(), C, tile_hw), lambda b, t: (b, 0, t)),
                pl.BlockSpec((Ch, C), lambda b, t: (0, 0)),
                pl.BlockSpec((Ch, C), lambda b, t: (0, 0)),
            ],
            out_specs=pl.BlockSpec((pl.Squeezed(), 1, C), lambda b, t: (b, 0, 0)),
            scratch_shapes=[
                pltpu.VMEM((C, 1), jnp.float32),    # running sum
                pltpu.VMEM((C, 1), jnp.float32),    # running max
            ],
        ),
        compiler_params=pltpu.CompilerParams(
            dimension_semantics=("parallel", "arbitrary")),
        cost_estimate=pl.CostEstimate(
            flops=2 * B * C * hw_pad + B * (4 * Ch * C + 2 * Ch * C),
            transcendentals=B * C,
            bytes_accessed=B * C * hw_pad * itemsize + 2 * Ch * C * 4 + B * C * itemsize,
        ),
    )(x_flat, w1, w2t)

    return out.reshape(B, C, 1, 1)


def reference(x, w1, w2):
    avg = jnp.mean(x, axis=(2, 3))            # (B, C)
    mx = jnp.max(x, axis=(2, 3))              # (B, C)

    def fc(v):
        h = jnp.maximum(v @ w1.T, 0.0)        # (B, Ch)
        return h @ w2.T                       # (B, C)

    out = jax.nn.sigmoid(fc(avg) + fc(mx))
    return out.reshape(*out.shape, 1, 1)


if __name__ == "__main__":
    key = jax.random.PRNGKey(0)
    B, C = 2, 32                        # in_planes=32 -> hidden = 32 // 16 = 2
    Ch = C // 16

    kx1, kx2, k1, k2 = jax.random.split(key, 4)
    # deterministic synthetic weights for the two bias-free 1x1 convs
    w1 = jax.random.normal(k1, (Ch, C), dtype=jnp.float32) * (1.0 / jnp.sqrt(C))
    w2 = jax.random.normal(k2, (C, Ch), dtype=jnp.float32) * (1.0 / jnp.sqrt(Ch))

    # Case 1: lane-aligned spatial size (single tile, init+finalize same step).
    x1 = jax.random.normal(kx1, (B, C, 16, 16), dtype=jnp.float32)
    y1 = jax.block_until_ready(channel_attention(x1, w1, w2))
    assert y1.shape == (B, C, 1, 1)
    assert jnp.allclose(y1, reference(x1, w1, w2), atol=1e-5, rtol=1e-5), \
        "mismatch vs reference (case 1)"

    # Case 2: ragged spatial size with a forced small tile -> exercises
    # multi-tile accumulation and the padded-tail masking path.
    x2 = jax.random.normal(kx2, (B, C, 12, 12), dtype=jnp.float32)
    y2 = jax.block_until_ready(channel_attention(x2, w1, w2, tile_hw=128))
    assert y2.shape == (B, C, 1, 1)
    assert jnp.allclose(y2, reference(x2, w1, w2), atol=1e-5, rtol=1e-5), \
        "mismatch vs reference (case 2)"

    print("KERNEL_OK")
</pallas_src>

<mosaic_0001>
module attributes {stable_mosaic.version = 11 : i64} {
  func.func @_channel_attention_kernel(%arg0: i32, %arg1: i32, %arg2: memref<1x32x256xf32, #tpu.memory_space<vmem>>, %arg3: memref<2x32xf32, #tpu.memory_space<vmem>>, %arg4: memref<2x32xf32, #tpu.memory_space<vmem>>, %arg5: memref<1x1x32xf32, #tpu.memory_space<vmem>>, %arg6: memref<32x1xf32, #tpu.memory_space<vmem>>, %arg7: memref<32x1xf32, #tpu.memory_space<vmem>>) attributes {dimension_semantics = [#tpu.dimension_semantics<parallel>, #tpu.dimension_semantics<arbitrary>], iteration_bounds = array<i64: 2, 1>, scalar_prefetch = 0 : i64, scratch_operands = 2 : i64, tpu.core_type = #tpu.core_type<tc>, window_params = [{transform_indices = @transform_0, window_bounds = array<i64: 1, 32, 256>}, {pipeline_mode = #tpu.pipeline_mode<synchronous>, transform_indices = @transform_1, window_bounds = array<i64: 2, 32>}, {pipeline_mode = #tpu.pipeline_mode<synchronous>, transform_indices = @transform_2, window_bounds = array<i64: 2, 32>}, {transform_indices = @transform_3, window_bounds = array<i64: 1, 1, 32>}]} {
    %c0_i32 = arith.constant 0 : i32
    %0 = arith.cmpi eq, %arg1, %c0_i32 : i32
    %1 = arith.extui %0 : i1 to i32
    %c0_i32_0 = arith.constant 0 : i32
    %2 = arith.cmpi ne, %1, %c0_i32_0 : i32
    scf.if %2 {
      %cst_14 = arith.constant 0.000000e+00 : f32
      %18 = vector.broadcast %cst_14 : f32 to vector<32x1xf32>
      %c0_15 = arith.constant 0 : index
      %c0_16 = arith.constant 0 : index
      %19 = vector.load %arg6[%c0_15, %c0_16] : memref<32x1xf32, #tpu.memory_space<vmem>>, vector<32x1xf32>
      tpu.vector_store %arg6[%c0_15, %c0_16], %18 {strides = array<i32>} : memref<32x1xf32, #tpu.memory_space<vmem>>, vector<32x1xf32>,
      %cst_17 = arith.constant 0xFF800000 : f32
      %20 = vector.broadcast %cst_17 : f32 to vector<32x1xf32>
      %c0_18 = arith.constant 0 : index
      %c0_19 = arith.constant 0 : index
      %21 = vector.load %arg7[%c0_18, %c0_19] : memref<32x1xf32, #tpu.memory_space<vmem>>, vector<32x1xf32>
      tpu.vector_store %arg7[%c0_18, %c0_19], %20 {strides = array<i32>} : memref<32x1xf32, #tpu.memory_space<vmem>>, vector<32x1xf32>,
    } else {
    }
    %c0 = arith.constant 0 : index
    %c0_1 = arith.constant 0 : index
    %c0_2 = arith.constant 0 : index
    %3 = vector.load %arg2[%c0, %c0_1, %c0_2] : memref<1x32x256xf32, #tpu.memory_space<vmem>>, vector<1x32x256xf32>
    %4 = vector.shape_cast %3 : vector<1x32x256xf32> to vector<32x256xf32>
    %c0_3 = arith.constant 0 : index
    %c0_4 = arith.constant 0 : index
    %5 = vector.load %arg6[%c0_3, %c0_4] : memref<32x1xf32, #tpu.memory_space<vmem>>, vector<32x1xf32>
    %cst = arith.constant dense<0.000000e+00> : vector<32xf32>
    %6 = vector.multi_reduction <add>, %4, %cst [1] : vector<32x256xf32> to vector<32xf32>
    %7 = vector.shape_cast %6 : vector<32xf32> to vector<32x1xf32>
    %8 = arith.addf %5, %7 : vector<32x1xf32>
    %c0_5 = arith.constant 0 : index
    %c0_6 = arith.constant 0 : index
    %9 = vector.load %arg6[%c0_5, %c0_6] : memref<32x1xf32, #tpu.memory_space<vmem>>, vector<32x1xf32>
    tpu.vector_store %arg6[%c0_5, %c0_6], %8 {strides = array<i32>} : memref<32x1xf32, #tpu.memory_space<vmem>>, vector<32x1xf32>,
    %c0_7 = arith.constant 0 : index
    %c0_8 = arith.constant 0 : index
    %10 = vector.load %arg7[%c0_7, %c0_8] : memref<32x1xf32, #tpu.memory_space<vmem>>, vector<32x1xf32>
    %cst_9 = arith.constant dense<0xFF800000> : vector<32xf32>
    %11 = vector.multi_reduction <maximumf>, %4, %cst_9 [1] : vector<32x256xf32> to vector<32xf32>
    %12 = vector.shape_cast %11 : vector<32xf32> to vector<32x1xf32>
    %13 = arith.maximumf %10, %12 : vector<32x1xf32>
    %c0_10 = arith.constant 0 : index
    %c0_11 = arith.constant 0 : index
    %14 = vector.load %arg7[%c0_10, %c0_11] : memref<32x1xf32, #tpu.memory_space<vmem>>, vector<32x1xf32>
    tpu.vector_store %arg7[%c0_10, %c0_11], %13 {strides = array<i32>} : memref<32x1xf32, #tpu.memory_space<vmem>>, vector<32x1xf32>,
    %c0_i32_12 = arith.constant 0 : i32
    %15 = arith.cmpi eq, %arg1, %c0_i32_12 : i32
    %16 = arith.extui %15 : i1 to i32
    %c0_i32_13 = arith.constant 0 : i32
    %17 = arith.cmpi ne, %16, %c0_i32_13 : i32
    scf.if %17 {
      %c0_14 = arith.constant 0 : index
      %c0_15 = arith.constant 0 : index
      %18 = vector.load %arg6[%c0_14, %c0_15] : memref<32x1xf32, #tpu.memory_space<vmem>>, vector<32x1xf32>
      %cst_16 = arith.constant 3.906250e-03 : f32
      %19 = vector.broadcast %cst_16 : f32 to vector<32x1xf32>
      %20 = arith.mulf %18, %19 : vector<32x1xf32>
      %c0_17 = arith.constant 0 : index
      %c0_18 = arith.constant 0 : index
      %21 = vector.load %arg7[%c0_17, %c0_18] : memref<32x1xf32, #tpu.memory_space<vmem>>, vector<32x1xf32>
      %22 = tpu.iota {dimensions = array<i32: 1>} : vector<32x2xi32>
      %c0_i32_19 = arith.constant 0 : i32
      %23 = vector.broadcast %c0_i32_19 : i32 to vector<32x2xi32>
      %24 = arith.cmpi eq, %22, %23 : vector<32x2xi32>
      %25 = vector.shape_cast %20 : vector<32x1xf32> to vector<32x1xf32>
      %26 = vector.broadcast %25 : vector<32x1xf32> to vector<32x2xf32>
      %27 = vector.shape_cast %21 : vector<32x1xf32> to vector<32x1xf32>
      %28 = vector.broadcast %27 : vector<32x1xf32> to vector<32x2xf32>
      %29 = arith.select %24, %26, %28 : vector<32x2xi1>, vector<32x2xf32>
      %c0_20 = arith.constant 0 : index
      %c0_21 = arith.constant 0 : index
      %30 = vector.load %arg3[%c0_20, %c0_21] : memref<2x32xf32, #tpu.memory_space<vmem>>, vector<2x32xf32>
      %cst_22 = arith.constant dense<0.000000e+00> : vector<2x2xf32>
      %31 = tpu.matmul %30, %29, %cst_22 {dimension_numbers = #tpu.dot_dimension_numbers<[1], [0], [0], [1], [0, 0, 1, 1], [], []>} : vector<2x32xf32>, vector<32x2xf32>, vector<2x2xf32> -> vector<2x2xf32>
      %cst_23 = arith.constant 0.000000e+00 : f32
      %32 = vector.broadcast %cst_23 : f32 to vector<2x2xf32>
      %33 = arith.maximumf %31, %32 : vector<2x2xf32>
      %cst_24 = arith.constant dense<0.000000e+00> : vector<2xf32>
      %34 = vector.multi_reduction <add>, %33, %cst_24 [1] : vector<2x2xf32> to vector<2xf32>
      %35 = vector.shape_cast %34 : vector<2xf32> to vector<2x1xf32>
      %c0_25 = arith.constant 0 : index
      %c0_26 = arith.constant 0 : index
      %36 = vector.load %arg4[%c0_25, %c0_26] : memref<2x32xf32, #tpu.memory_space<vmem>>, vector<2x32xf32>
      %37 = vector.broadcast %35 : vector<2x1xf32> to vector<2x32xf32>
      %38 = arith.mulf %36, %37 : vector<2x32xf32>
      %cst_27 = arith.constant dense<0.000000e+00> : vector<32xf32>
      %39 = vector.multi_reduction <add>, %38, %cst_27 [0] : vector<2x32xf32> to vector<32xf32>
      %40 = vector.shape_cast %39 : vector<32xf32> to vector<1x32xf32>
      %41 = arith.negf %40 : vector<1x32xf32>
      %42 = math.exp %41 : vector<1x32xf32>
      %cst_28 = arith.constant 1.000000e+00 : f32
      %43 = vector.broadcast %cst_28 : f32 to vector<1x32xf32>
      %44 = arith.addf %43, %42 : vector<1x32xf32>
      %45 = arith.divf %43, %44 : vector<1x32xf32>
      %c0_29 = arith.constant 0 : index
      %c0_30 = arith.constant 0 : index
      %c0_31 = arith.constant 0 : index
      %46 = vector.load %arg5[%c0_29, %c0_30, %c0_31] : memref<1x1x32xf32, #tpu.memory_space<vmem>>, vector<1x1x32xf32>
      %47 = vector.shape_cast %46 : vector<1x1x32xf32> to vector<1x32xf32>
      %48 = vector.shape_cast %45 : vector<1x32xf32> to vector<1x1x32xf32>
      tpu.vector_store %arg5[%c0_29, %c0_30, %c0_31], %48 {strides = array<i32>} : memref<1x1x32xf32, #tpu.memory_space<vmem>>, vector<1x1x32xf32>,
    } else {
    }
    return
  }
  func.func @transform_0(%arg0: i32, %arg1: i32) -> (i32, i32, i32) {
    %c0_i32 = arith.constant 0 : i32
    %c0_i32_0 = arith.constant 0 : i32
    return %arg0, %c0_i32, %arg1 : i32, i32, i32
  }
  func.func @transform_1(%arg0: i32, %arg1: i32) -> (i32, i32) {
    %c0_i32 = arith.constant 0 : i32
    %c0_i32_0 = arith.constant 0 : i32
    %c0_i32_1 = arith.constant 0 : i32
    return %c0_i32, %c0_i32_0 : i32, i32
  }
  func.func @transform_2(%arg0: i32, %arg1: i32) -> (i32, i32) {
    %c0_i32 = arith.constant 0 : i32
    %c0_i32_0 = arith.constant 0 : i32
    %c0_i32_1 = arith.constant 0 : i32
    return %c0_i32, %c0_i32_0 : i32, i32
  }
  func.func @transform_3(%arg0: i32, %arg1: i32) -> (i32, i32, i32) {
    %c0_i32 = arith.constant 0 : i32
    %c0_i32_0 = arith.constant 0 : i32
    %c0_i32_1 = arith.constant 0 : i32
    return %arg0, %c0_i32, %c0_i32_0 : i32, i32, i32
  }
}

</mosaic_0001>

<bundles_post_ra>
// kernel: tpu_custom_call.1
= control target key start
LH: loop header
LB: loop body
LE: loop exit
PB: predicated region body
PF: predicated region fallthrough
CT: control target
= control target key end

     0   :  { %s1051_s0 = inlined_call_operand.hbm [shape: f32[2,32,256], index: 0, kind: input, shape index: {}]   ;;  %s1052_s1 = inlined_call_operand.hbm [shape: f32[2,32], index: 1, kind: input, shape index: {}]   ;;  %s1053_s2 = inlined_call_operand.hbm [shape: f32[2,32], index: 2, kind: input, shape index: {}]   ;;  %s1054_s3 = inlined_call_operand.hbm [shape: f32[2,1,32], index: 3, kind: output, shape index: {}]  }
   0x1   :  { %1055 = sst [smem:[#allocation14_spill]] %s1052_s1 }
   0x2   :  { %8 = vsyncpa [#allocation5], 0 }
   0x3   :  { %10 = vsyncpa [#allocation5 + $0x1], 0 }
   0x4   :  { %11 = vsyncpa [#allocation8], 0 }
   0x5   :  { %12 = vsyncpa [#allocation6], 0 }
   0x6   :  { %14 = vsyncpa [#allocation6 + $0x1], 0  ;;  %s876_s12 = smov 0   ;;  %s878_s13 = smov 0  }
   0x7   :  { %s880_s14 = smov 0   ;;  %s882_s15 = smov 0  }
   0x8   :  { %s884_s16 = smov 0   ;;  %s886_s17 = smov 0  }
   0x9 LB: > { %s538_s18 = sadd.s32 4294967295, %s847_s17   ;;  %s539_s19 = sadd.s32 4294967294, %s847_s17   ;;  %s847_s17 = sphi %s886_s17, %s20_s17   ;;  %s843_s16 = sphi %s884_s16, %s1068_s16   ;;  %s839_s15 = sphi %s882_s15, %s1067_s15   ;;  %s835_s14 = sphi %s880_s14, %s1066_s14   ;;  %s831_s13 = sphi %s878_s13, %s1065_s13   ;;  %s827_s12 = sphi %s876_s12, %s1064_s12  }
   0xa   : > { %s41_s20 = sadd.s32 1, %s835_s14  ;;  %p48_p0 = scmp.ne.s32.totalorder %s835_s14, %s831_s13 }
   0xb   : > { %p49_p1 = scmp.eq.s32.totalorder %s847_s17, 0  ;;  %p54_p2 = scmp.ne.s32.totalorder %s831_s13, %s827_s12 }
   0xc   : > { %p914_p3 = scmp.eq.s32.totalorder %s538_s18, 0  ;;  %p120_p4 = scmp.eq.s32.totalorder %s538_s18, 1 }
   0xd   : > { %p918_p5 = por %p49_p1, %p48_p0  ;;  %p126_p6 = scmp.eq.s32.totalorder %s539_s19, 1 }
   0xe   : > { %p924_p7 = por %p914_p3, %p54_p2  ;;  %p928_p8 = por %p120_p4, %p48_p0 }
   0xf   : > { %p932_p9 = por %p126_p6, %p54_p2  ;;  %p540_p10 = scmp.ge.s32.totalorder %s847_s17, 1 }
  0x10   : > { %p133_p11 = scmp.lt.s32.totalorder %s847_s17, 3  ;;  %s1061_s1 = sld [smem:[#allocation14_spill]] }
  0x11   : > { %s849_s30 = smov [#allocation7]   ;;  %p543_p13 = scmp.ge.s32.totalorder %s847_s17, 2 }
  0x12   : > { %p941_p12 = pnand %p540_p10, %p133_p11  ;;  %s147_s4 = sshll.u32 %s849_s30, 4  ;;  %s148_s4 = int_to_ptr.vmem [resolvable:$true] %s147_s4 }
  0x13   : > { %p585_p1 = scmp.lt.s32.totalorder %s847_s17, 2  ;;  %s157_s7 = sshll.u32 %s1053_s2, 4  ;;  %s158_s7 = int_to_ptr.hbm [resolvable:$true] %s157_s7 }
  0x14   : > { %p568_p0 = pneg %p941_p12  ;;  %s850_s9 = smov [#allocation9]  }
  0x15   : > { %p956_p4 = pnand %p585_p1, %p918_p5  ;;  %s159_s10 = sshll.u32 %s850_s9, 4  ;;  %s160_s10 = int_to_ptr.vmem [resolvable:$true] %s159_s10 }
  0x16   : > { %s145_s28 = sshll.u32 %s1061_s1, 4  ;;  %p569_p2 = pnand %p568_p0, %p914_p3  ;;  %s146_s28 = int_to_ptr.hbm [resolvable:$true] %s145_s28 }
  0x17   : > { %s170_s11 = sand.u32 1, %s835_s14   ;;  %s32_s18 = sadd.s32 1, %s843_s16 }
  0x18   : > { %571 = dma.hbm_to_vmem [thread:$0]  (!%p569_p2), %s146_s28, 32, %s148_s4, [#allocation8]  }
  0x19   : > { %574 = dma.hbm_to_vmem [thread:$0]  (!%p569_p2), %s158_s7, 32, %s160_s10, [#allocation8]  }
  0x1a   : > { %s544_s19 = sshll.u32 %s170_s11, 6  ;;  %p34_p6 = scmp.ge.s32.totalorder %s32_s18, 2 }
  0x1b   : > { %s555_s26 = sshll.u32 %s843_s16, 6  ;;  %s174_s27 = scalar_lea.vmem [#allocation4], %s544_s19 }
  0x1c   : > { %s184_s22 = sshll.u32 %s174_s27, 4  ;;  %s1070_s18 = smov (%p34_p6, %s32_s18), 0  ;;  %s185_s22 = int_to_ptr.vmem [resolvable:$true] %s184_s22 }
  0x1d   : > { %s181_s6 = scalar_lea.hbm %s1051_s0, %s555_s26  ;;  %s36_s28 = ssub.s32 %s843_s16, %s1070_s18 }
  0x1e   : > { %s182_s4 = sshll.u32 %s181_s6, 4  ;;  %p39_p5 = scmp.eq.s32.totalorder %s36_s28, 0  ;;  %s183_s4 = int_to_ptr.hbm [resolvable:$true] %s182_s4 }
  0x1f   : > { %s171_s9 = scalar_lea.sflag [#allocation5], %s170_s11  ;;  %s851_s10 = smov 256  }
  0x20   : > { %s973_s7 = scalar_select %p39_p5, %s835_s14, %s41_s20  }
  0x21   : > { %s852_s1 = smov 16   ;;  %196 = sbr.rel (%p941_p12) target bundleno = 600 (0x258), region = 32 }
  0x22   : > { %578 = dma.hbm_to_vmem [thread:$0]  (!%p956_p4), %s183_s4, 1024, %s185_s22, %s171_s9, %s851_s10, %s851_s10, %s852_s1  }
  0x23   : > { %s980_s19 = sand.u32 (!%p941_p12), 1, %s831_s13  }
  0x24   : > { %s548_s26 = sshll.u32 (!%p941_p12), %s980_s19, 6  ;;  %s199_s27 = scalar_lea.sflag (!%p941_p12), [#allocation5], %s980_s19 }
  0x25   : > { %s202_s30 = scalar_lea.vmem (!%p941_p12), [#allocation4], %s548_s26 }
  0x26   : > { %814 = dma.done.wait (%p924_p7), %s199_s27, 1024  }
  0x27   : > { %816 = vsyncadd (%p924_p7), %s199_s27, 4294966272 }
  0x28   : > { %818 = dma.done.wait (%p914_p3), [#allocation8], 64  }
  0x29   : > { %820 = vsyncadd (%p914_p3), [#allocation8], 4294967232  ;;  %vm240_vm0 = vcmask 7168   ;;  %v853_v0 = vmov 0.0   ;;  %v255_v1 = vld [vmem:[%s202_s30 + $0x30] sm:$0xff]  ;;  %v256_v2 = vld [vmem:[%s202_s30 + $0x38] sm:$0xff]  ;;  %v321_v59 = vlaneseq  ;;  %s438_s21 = scalar_lea.hbm %s1054_s3, %s839_s15 }
  0x2a   : > { %244 = vst.msk [vmem:[#allocation2 + $0x18] sm:$0xff] %vm240_vm0, %v853_v0  ;;  %v270_v3 = vadd.f32 %v256_v2, %v255_v1  ;;  %v295_v4 = vmax.f32 %v255_v1, %v256_v2  ;;  %v253_v5 = vld [vmem:[%s202_s30 + $0x20] sm:$0xff]  ;;  %v254_v6 = vld [vmem:[%s202_s30 + $0x28] sm:$0xff]  ;;  %v251_v8 = vld [vmem:[%s202_s30 + $0x10] sm:$0xff]  ;;  %v854_v17 = vmov -inf   ;;  %v855_v18 = vmov 0  }
  0x2b   : > { %241 = vst.msk [vmem:[#allocation2] sm:$0xff] %vm240_vm0, %v853_v0  ;;  %v292_v7 = vmax.f32 %v253_v5, %v254_v6  ;;  %v252_v9 = vld [vmem:[%s202_s30 + $0x18] sm:$0xff]  ;;  %v249_v10 = vld [vmem:[%s202_s30] sm:$0xff]  ;;  %v250_v11 = vld [vmem:[%s202_s30 + $0x8] sm:$0xff]  ;;  %v267_v12 = vadd.f32 %v254_v6, %v253_v5  ;;  %644 = vset.pattern.permute.xlu2 %v855_v18  ;;  %650 = vset.pattern.permute.xlu0 %v855_v18  ;;  %v322_v60 = vand.u32 127, %v321_v59  ;;  %vm369_vm2 = vcmask 261120  }
  0x2c   : > { %242 = vst.msk [vmem:[#allocation2 + $0x8] sm:$0xff] %vm240_vm0, %v853_v0  ;;  %271 = vadd.xlane.f32.xlu0 %v270_v3  ;;  %296 = vmax.xlane.f32.xlu1 %v295_v4  ;;  %v264_v13 = vadd.f32 %v252_v9, %v251_v8  ;;  %v261_v14 = vadd.f32 %v250_v11, %v249_v10  ;;  %vm394_vm3 = vcmask 9216   ;;  %vm400_vm4 = vcmask 254976   ;;  %s234_s23 = scalar_lea.vmem [#allocation10], %s980_s19  ;;  %s442_s8 = sshll.u32 %s438_s21, 4  ;;  %s443_s8 = int_to_ptr.hbm [resolvable:$true] %s442_s8 }
  0x2d   : > { %243 = vst.msk [vmem:[#allocation2 + $0x10] sm:$0xff] %vm240_vm0, %v853_v0  ;;  %293 = vmax.xlane.f32.xlu2 %v292_v7  ;;  %v289_v15 = vmax.f32 %v251_v8, %v252_v9  ;;  %v286_v16 = vmax.f32 %v249_v10, %v250_v11  ;;  %656 = vset.pattern.permute.xlu1 %v855_v18  ;;  %vm323_vm1 = vcmp.eq.s32.totalorder %v322_v60, 0  ;;  %s440_s29 = sshll.u32 %s234_s23, 4  ;;  %vm427_vm8 = vcmask 253952   ;;  %s430_s15 = scalar_lea.sflag [#allocation6], %s980_s19  ;;  %s441_s29 = int_to_ptr.vmem [resolvable:$true] %s440_s29 }
  0x2e   : > { %248 = vst.msk [vmem:[#allocation3 + $0x18] sm:$0xff] %vm240_vm0, %v854_v17  ;;  %s775_s11 = sshra.s32 %s443_s8, 4  ;;  %s781_s28 = scalar_lea.hbm %s1054_s3, 2  ;;  %s776_s11 = int_to_ptr.hbm [resolvable:$true] %s775_s11 }
  0x2f   : > { %245 = vst.msk [vmem:[#allocation3] sm:$0xff] %vm240_vm0, %v854_v17  ;;  %s777_s22 = scalar_lea.hbm %s776_s11, 1  ;;  %p782_p11 = scmp.lt.s32.totalorder %s776_s11, %s1054_s3 }
  0x30   : > { %246 = vst.msk [vmem:[#allocation3 + $0x8] sm:$0xff] %vm240_vm0, %v854_v17  ;;  %p778_p3 = scmp.ne.s32.totalorder %s776_s11, %s777_s22  ;;  %p783_p12 = scmp.lt.s32.totalorder %s781_s28, %s777_s22 }
  0x31   : > { %247 = vst.msk [vmem:[#allocation3 + $0x10] sm:$0xff] %vm240_vm0, %v854_v17  ;;  %v260_v19 = vld [vmem:[#allocation2 + $0x18] sm:$0xff]  ;;  %v398_v17 = vld [vmem:[#allocation9] sm:$0x3] }
  0x32   : > { %v257_v30 = vld [vmem:[#allocation2] sm:$0xff]  ;;  %p779_p7 = pnand %p778_p3, %p928_p8  ;;  %p784_p0 = por %p783_p12, %p782_p11 }
  0x33   : > { %v258_v29 = vld [vmem:[#allocation2 + $0x8] sm:$0xff] }
  0x34   : > { %268 = vadd.xlane.f32.xlu0 %v267_v12  ;;  %265 = vadd.xlane.f32.xlu1 %v264_v13  ;;  %v259_v28 = vld [vmem:[#allocation2 + $0x10] sm:$0xff]  ;;  %v368_v12 = vld [vmem:[#allocation7] sm:$0x3]  ;;  %p780_p10 = pneg %p779_p7 }
  0x35   : > { %262 = vadd.xlane.f32.xlu2 %v261_v14  ;;  %v285_v20 = vld [vmem:[#allocation3 + $0x18] sm:$0xff] }
  0x36   : > { %v282_v42 = vld [vmem:[#allocation3] sm:$0xff]  ;;  %p785_p1 = pnand %p784_p0, %p780_p10 }
  0x37   : > { %v283_v41 = vld [vmem:[#allocation3 + $0x8] sm:$0xff] }
  0x38   : > { %v284_v21 = vld [vmem:[#allocation3 + $0x10] sm:$0xff] }
  0x3c   : > { %290 = vmax.xlane.f32.xlu0 %v289_v15  ;;  %287 = vmax.xlane.f32.xlu1 %v286_v16 }
  0x9f   : > { %v272_v22 = vpop.xlane.xlu0 %271  ;;  %v297_v23 = vpop.xlane.xlu1 %296 }
  0xa0   : > { %v276_v24 = vadd.f32 %v272_v22, %v260_v19  ;;  %v301_v25 = vmax.f32 %v285_v20, %v297_v23  ;;  %v294_v26 = vpop.xlane.xlu2 %293 }
  0xa1   : > { %v300_v27 = vmax.f32 %v284_v21, %v294_v26 }
  0xa2   : > { %281 = vst.msk [vmem:[#allocation2 + $0x18] sm:$0xff] %vm240_vm0, %v276_v24 }
  0xa3   : > { %305 = vst.msk [vmem:[#allocation3 + $0x18] sm:$0xff] %vm240_vm0, %v301_v25 }
  0xa4   : > { %304 = vst.msk [vmem:[#allocation3 + $0x10] sm:$0xff] %vm240_vm0, %v300_v27 }
  0xa7   : > { %v269_v31 = vpop.xlane.xlu0 %268  ;;  %v266_v32 = vpop.xlane.xlu1 %265 }
  0xa8   : > { %v275_v33 = vadd.f32 %v269_v31, %v259_v28  ;;  %v274_v34 = vadd.f32 %v266_v32, %v258_v29  ;;  %v263_v35 = vpop.xlane.xlu2 %262 }
  0xa9   : > { %v312_v36 = vld [vmem:[#allocation2 + $0x18] sm:$0xff]  ;;  %v273_v37 = vadd.f32 %v263_v35, %v257_v30 }
  0xaa   : > { %280 = vst.msk [vmem:[#allocation2 + $0x10] sm:$0xff] %vm240_vm0, %v275_v33  ;;  %v316_v38 = vmul.f32 0.00390625, %v312_v36  ;;  %v320_v39 = vld [vmem:[#allocation3 + $0x18] sm:$0xff] }
  0xab   : > { %279 = vst.msk [vmem:[#allocation2 + $0x8] sm:$0xff] %vm240_vm0, %v274_v34  ;;  %v319_v48 = vld [vmem:[#allocation3 + $0x10] sm:$0xff] }
  0xac   : > { %v645_v40 = vpack.i.bf16 %v320_v39, %v316_v38  ;;  %278 = vst.msk [vmem:[#allocation2] sm:$0xff] %vm240_vm0, %v273_v37 }
  0xae   : > { %646 = vperm.xlu2 %644, %v645_v40  }
  0xaf   : > { %v291_v43 = vpop.xlane.xlu0 %290  ;;  %v288_v44 = vpop.xlane.xlu1 %287 }
  0xb0   : > { %v299_v45 = vmax.f32 %v283_v41, %v291_v43  ;;  %v298_v46 = vmax.f32 %v282_v42, %v288_v44 }
  0xb1   : > { %v311_v47 = vld [vmem:[#allocation2 + $0x10] sm:$0xff] }
  0xb2   : > { %303 = vst.msk [vmem:[#allocation3 + $0x8] sm:$0xff] %vm240_vm0, %v299_v45  ;;  %v315_v49 = vmul.f32 0.00390625, %v311_v47  ;;  %v310_v50 = vld [vmem:[#allocation2 + $0x8] sm:$0xff] }
  0xb3   : > { %302 = vst.msk [vmem:[#allocation3] sm:$0xff] %vm240_vm0, %v298_v46  ;;  %v309_v52 = vld [vmem:[#allocation2] sm:$0xff]  ;;  %v314_v53 = vmul.f32 0.00390625, %v310_v50 }
  0xb4   : > { %v651_v51 = vpack.i.bf16 %v319_v48, %v315_v49  ;;  %v313_v54 = vmul.f32 0.00390625, %v309_v52 }
  0xb6   : > { %652 = vperm.xlu0 %650, %v651_v51  }
  0xb9   : > { %v318_v55 = vld [vmem:[#allocation3 + $0x8] sm:$0xff] }
  0xba   : > { %v657_v56 = vpack.i.bf16 %v318_v55, %v314_v53  ;;  %v317_v57 = vld [vmem:[#allocation3] sm:$0xff] }
  0xbb   : > { %v662_v58 = vpack.i.bf16 %v317_v57, %v313_v54 }
  0xbc   : > { %658 = vperm.xlu1 %656, %v657_v56  }
  0xbd   : > { %663 = vperm.xlu2 %644, %v662_v58  }
 0x108   : > { %v647_v61 = vpop.permute.xlu2 %646 }
 0x109   : > { %v649_v62 = vunpack.i.h.bf16 %v647_v61  ;;  %v648_v63 = vunpack.i.l.bf16 %v647_v61 }
 0x10b   : > { %v367_v0 = vsel %vm323_vm1, %v648_v63, %v649_v62 }
 0x10c   : > { %385 = vmatpush.msra.mxu0 %v367_v0 }
 0x117   : > { %v664_v5 = vpop.permute.xlu2 %663 }
 0x118   : > { %v666_v7 = vunpack.i.h.bf16 %v664_v5  ;;  %v665_v8 = vunpack.i.l.bf16 %v664_v5 }
 0x11a   : > { %v364_v13 = vsel %vm323_vm1, %v665_v8, %v666_v7 }
 0x128   : > { %v653_v1 = vpop.permute.xlu0 %652 }
 0x129   : > { %v655_v2 = vunpack.i.h.bf16 %v653_v1  ;;  %v654_v3 = vunpack.i.l.bf16 %v653_v1 }
 0x12b   : > { %v366_v4 = vsel %vm323_vm1, %v654_v3, %v655_v2 }
 0x12c   : > { %386 = vmatpush.msra.mxu0 %v366_v4 }
 0x12e   : > { %v659_v6 = vpop.permute.xlu1 %658 }
 0x12f   : > { %v661_v9 = vunpack.i.h.bf16 %v659_v6  ;;  %v660_v10 = vunpack.i.l.bf16 %v659_v6 }
 0x131   : > { %v365_v11 = vsel %vm323_vm1, %v660_v10, %v661_v9 }
 0x132   : > { %387 = vmatpush.msra.mxu0 %v365_v11 }
 0x134   : > { %388 = vmatpush.msra.mxu0 %v364_v13 }
 0x135   : > { %551 = vmatmul.msk.f32.vlgmr.msra.gmra.mxu0 %vm369_vm2, %v368_v12 }
 0x1b2   : > { %v390_v14 = vpop.f32.mrf.mxu0 }
 0x1b3   : > { %v393_v15 = vmax.f32 %v390_v14, 0.0 }
 0x1b5   : > { %v395_v16 = vsel %vm394_vm3, %v393_v15, 0.0 }
 0x1b6   : > { %396 = vadd.xlane.f32.xlu2 %v395_v16 }
 0x229   : > { %v397_v18 = vpop.xlane.xlu2 %396 }
 0x22a   : > { %v399_v19 = vmul.f32 %v398_v17, %v397_v18 }
 0x22c   : > { %v401_v20 = vsel %vm400_vm4, %v399_v19, 0.0 }
 0x22d   : > { %v402_v21 = vrot.slane %v401_v20, 4 }
 0x22f   : > { %v403_v22 = vadd.f32 %v402_v21, %v401_v20 }
 0x231   : > { %v404_v23 = vrot.slane %v403_v22, 2 }
 0x233   : > { %v405_v24 = vadd.f32 %v404_v23, %v403_v22 }
 0x235   : > { %v406_v25 = vrot.slane %v405_v24, 1 }
 0x237   : > { %v407_v26 = vadd.f32 %v406_v25, %v405_v24 }
 0x239   : > { %v552_v27 = vmul.f32 -1.442695, %v407_v26 }
 0x23b   : > { %667 = vpow2.f32 %v552_v27 }
 0x241   : > { %v668_v28 = vpop.eup %667 }
 0x242   : > { %v411_v29 = vadd.f32 1.0, %v668_v28 }
 0x244   : > { %669 = vrcp.f32 %v411_v29  ;;  %v423_v33 = vand.u32 2147483648, %v411_v29  ;;  %v421_v35 = vand.u32 2147483647, %v411_v29  ;;  %vm417_vm6 = vweird.f32 %v411_v29 }
 0x246   : > { %v424_v37 = vor.u32 1.1754944e-38, %v423_v33  ;;  %vm422_vm9 = vcmp.eq.f32.partialorder %v421_v35, 8.507059e+37 }
 0x24a   : > { %v670_v30 = vpop.eup %669 }
 0x24b   : > { %v413_v31 = vmul.f32 %v670_v30, %v411_v29  ;;  %vm418_vm5 = vweird.f32 %v670_v30 }
 0x24c   : > { %vm419_vm7 = vmor %vm417_vm6, %vm418_vm5 }
 0x24d   : > { %v414_v32 = vsub.f32 1.0, %v413_v31 }
 0x24f   : > { %v415_v34 = vmul.f32 %v670_v30, %v414_v32 }
 0x251   : > { %v416_v36 = vadd.f32 %v670_v30, %v415_v34 }
 0x253   : > { %v420_v38 = vsel %vm419_vm7, %v670_v30, %v416_v36 }
 0x254   : > { %v425_v39 = vsel %vm422_vm9, %v424_v37, %v420_v38 }
 0x255   : > { %428 = vst.msk [vmem:[%s234_s23] sm:$0x1] %vm427_vm8, %v425_v39 }
 0x256   : > { %788 = shalt.err (!%p785_p1)
}
 0x257   : > { %566 = dma.vmem_to_hbm [thread:$0]  (%p928_p8), %s441_s29, 16, %s443_s8, %s430_s15  }
 0x258 PF: > { %s454_s10 = sand.u32 1, %s827_s12   ;;  %p580_p2 = pnand %p543_p13, %p932_p9 }
 0x259   : > { %s455_s19 = scalar_lea.sflag [#allocation6], %s454_s10 }
 0x25a   : > { %p581_p4 = pneg %p580_p2 }
 0x25c   : > { %822 = dma.done.wait (%p581_p4), %s455_s19, 16  }
 0x25d   : > { %824 = vsyncadd (%p581_p4), %s455_s19, 4294967280  ;;  %s20_s17 = sadd.s32 1, %s847_s17   ;;  %s1064_s12 = smov %s831_s13 }
 0x25e   : > { %p17_p6 = scmp.ge.s32.totalorder %s20_s17, 4   ;;  %s1065_s13 = smov %s835_s14 }
 0x25f   : > { %s1066_s14 = smov %s973_s7  ;;  %s1067_s15 = smov %s843_s16 }
 0x260   : > { %s1068_s16 = smov %s1070_s18  ;;  %19 = sbr.rel (!%p17_p6) target bundleno = 9 (0x9), region = 93 }
 0x265   :  { %460 = vsyncpa [#allocation5], 1 }
 0x266   :  { %462 = vsyncpa [#allocation5 + $0x1], 1 }
 0x267   :  { %463 = vsyncpa [#allocation8], 1 }
 0x268   :  { %464 = vsyncpa [#allocation6], 1 }
 0x269   :  { %466 = vsyncpa [#allocation6 + $0x1], 1 }

</bundles_post_ra>
